<compile_context>
chip_gen: v5e
topology: v5e:2x2
jax: 0.10.0
libtpu: 0.0.40
codegen_flags: <defaults>
</compile_context>

<pallas_src>
import functools
import math

import jax
import jax.numpy as jnp
from jax.experimental import pallas as pl
from jax.experimental.pallas import tpu as pltpu


# ------------------------------ tiling helper --------------------------------

def _pick_tile(n, target=256):
    """Largest divisor of n that is <= target, preferring multiples of 8."""
    if n <= target:
        return n
    for t in range(target, 0, -1):
        if n % t == 0 and t % 8 == 0:
            return t
    for t in range(target, 0, -1):
        if n % t == 0:
            return t
    return n
# TODO(synk): pad/mask ragged shapes (S or B*S not a multiple of 8) instead of relying on
# divisibility; the reference module's shapes (embed_dim=256, seq multiples of 8) divide cleanly.


# ----------------------------- tiled linear ----------------------------------

def _linear_kernel(x_ref, w_ref, o_ref):
    o_ref[...] = jnp.dot(
        x_ref[...], w_ref[...], preferred_element_type=jnp.float32
    ).astype(o_ref.dtype)


def _linear_bias_kernel(x_ref, w_ref, b_ref, o_ref):
    acc = jnp.dot(x_ref[...], w_ref[...], preferred_element_type=jnp.float32)
    o_ref[...] = (acc + b_ref[...].astype(jnp.float32)).astype(o_ref.dtype)


def _linear(x2d, w, bias=None, *, out_dtype):
    """x2d: (M, K), w: (K, N) already in x@W layout, bias: (1, N) or None."""
    M, K = x2d.shape
    _, N = w.shape
    tm = _pick_tile(M, target=256)
    tn = _pick_tile(N, target=256)
    grid = (M // tm, N // tn)

    in_specs = [
        pl.BlockSpec((tm, K), lambda i, j: (i, 0)),   # activation rows
        pl.BlockSpec((K, tn), lambda i, j: (0, j)),   # weight column tile (lane-dense)
    ]
    args = [x2d, w]
    if bias is None:
        kernel = _linear_kernel
    else:
        kernel = _linear_bias_kernel
        in_specs.append(pl.BlockSpec((1, tn), lambda i, j: (0, j)))
        args.append(bias)

    cost = pl.CostEstimate(
        flops=2 * M * K * N,
        transcendentals=0,
        bytes_accessed=2 * (M * K + K * N + M * N),
    )

    return pl.pallas_call(
        kernel,
        out_shape=jax.ShapeDtypeStruct((M, N), out_dtype),
        grid_spec=pltpu.PrefetchScalarGridSpec(
            num_scalar_prefetch=0,
            grid=grid,
            in_specs=in_specs,
            out_specs=pl.BlockSpec((tm, tn), lambda i, j: (i, j)),
        ),
        compiler_params=pltpu.CompilerParams(
            dimension_semantics=("parallel", "parallel"),
        ),
        cost_estimate=cost,
    )(*args)


# --------------- flash attention (all heads per step, online softmax) --------

def _attention_kernel(q_ref, k_ref, v_ref, o_ref, m_sc, l_sc, acc_sc,
                      *, num_heads, head_dim):
    """Grid = (B, Sq_tiles, Skv_tiles). Blocks carry all heads (E columns) at once.

    q_ref/k_ref/v_ref: (1, tq|tk, E) bf16 column-slices of the fused QKV activation.
    Scale is pre-folded into the Q weight columns. Running stats per head in f32 scratch.
    """
    kv = pl.program_id(2)

    @pl.when(kv == 0)
    def _():
        m_sc[...] = jnp.full_like(m_sc, -jnp.inf)
        l_sc[...] = jnp.zeros_like(l_sc)
        acc_sc[...] = jnp.zeros_like(acc_sc)

    q = q_ref[0]                       # (tq, E) bf16 (scale already folded into W_q)
    k = k_ref[0]                       # (tk, E) bf16
    v = v_ref[0]                       # (tk, E) bf16

    d = head_dim
    for h in range(num_heads):         # static unroll; in-VMEM lane slices per head
        q_h = q[:, h * d:(h + 1) * d]  # (tq, d)
        k_h = k[:, h * d:(h + 1) * d]  # (tk, d)
        v_h = v[:, h * d:(h + 1) * d]  # (tk, d)

        # q @ k^T without materializing a transpose: contract dim 1 of both operands.
        s = jax.lax.dot_general(
            q_h, k_h,
            dimension_numbers=(((1,), (1,)), ((), ())),
            preferred_element_type=jnp.float32,
        )                                                    # (tq, tk) f32

        m_prev = m_sc[h]                                     # (tq, 1) f32
        m_new = jnp.maximum(m_prev, jnp.max(s, axis=-1, keepdims=True))
        alpha = jnp.exp(m_prev - m_new)                      # (tq, 1) f32
        # bf16 exponent: s - m_new <= 0 so exp in [0,1]; bf16 EUP on v6e/v7x (~2x throughput).
        p = jnp.exp((s - m_new).astype(jnp.bfloat16))        # (tq, tk) bf16

        l_sc[h] = alpha * l_sc[h] + jnp.sum(
            p.astype(jnp.float32), axis=-1, keepdims=True)   # f32 accumulation
        acc_sc[h] = alpha * acc_sc[h] + jnp.dot(
            p, v_h, preferred_element_type=jnp.float32)      # (tq, d) f32
        m_sc[h] = m_new

    # Deferred normalization + head merge on the last KV step only.
    @pl.when(kv == pl.num_programs(2) - 1)
    def _():
        for h in range(num_heads):
            inv = pl.reciprocal(l_sc[h], approx=True)
            o_ref[0, :, h * d:(h + 1) * d] = (acc_sc[h] * inv).astype(o_ref.dtype)


def _attention(qkv, *, num_heads):
    """qkv: (B, S, 3E) bf16 fused projection output -> (B, S, E) bf16 attention output."""
    B, S, E3 = qkv.shape
    E = E3 // 3
    d = E // num_heads

    tq = _pick_tile(S, target=256)
    tk = _pick_tile(S, target=512)
    grid = (B, S // tq, S // tk)

    kernel = functools.partial(_attention_kernel, num_heads=num_heads, head_dim=d)

    q_spec = pl.BlockSpec((1, tq, E), lambda b, i, j: (b, i, 0))   # columns [0, E)
    k_spec = pl.BlockSpec((1, tk, E), lambda b, i, j: (b, j, 1))   # columns [E, 2E)
    v_spec = pl.BlockSpec((1, tk, E), lambda b, i, j: (b, j, 2))   # columns [2E, 3E)
    o_spec = pl.BlockSpec((1, tq, E), lambda b, i, j: (b, i, 0))

    cost = pl.CostEstimate(
        flops=4 * B * num_heads * S * S * d,       # qk^T and p@v
        transcendentals=B * num_heads * S * S,     # softmax exp
        bytes_accessed=2 * (3 * B * S * E3 + B * S * E),
    )

    return pl.pallas_call(
        kernel,
        out_shape=jax.ShapeDtypeStruct((B, S, E), qkv.dtype),
        grid_spec=pltpu.PrefetchScalarGridSpec(
            num_scalar_prefetch=0,
            grid=grid,
            in_specs=[q_spec, k_spec, v_spec],
            out_specs=o_spec,
            scratch_shapes=[
                pltpu.VMEM((num_heads, tq, 1), jnp.float32),   # running max per head
                pltpu.VMEM((num_heads, tq, 1), jnp.float32),   # running sum per head
                pltpu.VMEM((num_heads, tq, d), jnp.float32),   # running unnormalized output
            ],
        ),
        compiler_params=pltpu.CompilerParams(
            dimension_semantics=("parallel", "parallel", "arbitrary"),
        ),
        cost_estimate=cost,
    )(qkv, qkv, qkv)


# ------------------------------- full module ---------------------------------

def multi_head_attention(x, w_qkv, w_proj, b_proj, *, num_heads):
    """x: (B, S, E) f32. w_qkv: (3E, E) torch layout (no bias), w_proj: (E, E), b_proj: (E,)."""
    B, S, E = x.shape
    H = num_heads
    d = E // H
    assert d * H == E

    cdt = jnp.bfloat16
    scale = 1.0 / math.sqrt(d)

    # Fold 1/sqrt(d) into the Q output-columns of the QKV weight, in f32, at the cast site.
    col_scale = jnp.concatenate(
        [jnp.full((E,), scale, jnp.float32), jnp.ones((2 * E,), jnp.float32)])
    wqkv_t = (w_qkv.T.astype(jnp.float32) * col_scale[None, :]).astype(cdt)   # (E, 3E)
    wproj_t = w_proj.T.astype(cdt)                                            # (E, E)
    bproj = b_proj.reshape(1, E).astype(jnp.float32)
    x_b = x.astype(cdt)

    # 1) Fused QKV projection (no bias): (B*S, E) @ (E, 3E).
    qkv = _linear(x_b.reshape(B * S, E), wqkv_t, out_dtype=cdt)               # (B*S, 3E)

    # 2) Flash attention reads q/k/v straight out of the fused layout (free reshape only),
    #    splits heads in-kernel, and emits head-merged (B, S, E).
    attn = _attention(qkv.reshape(B, S, 3 * E), num_heads=H)                  # (B, S, E) bf16

    # 3) Output projection with bias (free reshape in, f32 out).
    out = _linear(attn.reshape(B * S, E), wproj_t, bproj, out_dtype=x.dtype)  # (B*S, E)

    # dropout = 0.0 in the reference config -> identity.
    return out.reshape(B, S, E)


# -------------------------------- reference ----------------------------------

def _reference(x, w_qkv, w_proj, b_proj, num_heads):
    """Pure-JAX f32 reference mirroring the PyTorch forward (dropout=0)."""
    B, S, E = x.shape
    d = E // num_heads
    qkv = x @ w_qkv.T
    qkv = qkv.reshape(B, S, 3, num_heads, d).transpose(2, 0, 3, 1, 4)
    q, k, v = qkv[0], qkv[1], qkv[2]
    attn = (q @ jnp.swapaxes(k, -2, -1)) / (d ** 0.5)
    attn = jax.nn.softmax(attn, axis=-1)
    out = (attn @ v).transpose(0, 2, 1, 3).reshape(B, S, E)
    return out @ w_proj.T + b_proj


if __name__ == "__main__":
    # Module constants: embed_dim=256, num_heads=4; small batch/seq for the demo.
    B, S, E, H = 2, 8, 256, 4

    key = jax.random.PRNGKey(0)
    kx, kqkv, kproj, kb = jax.random.split(key, 4)

    x = jax.random.normal(kx, (B, S, E), dtype=jnp.float32)
    # nn.Linear weight layout is (out_features, in_features).
    w_qkv = jax.random.normal(kqkv, (3 * E, E), dtype=jnp.float32) * 0.05
    w_proj = jax.random.normal(kproj, (E, E), dtype=jnp.float32) * 0.05
    b_proj = jax.random.normal(kb, (E,), dtype=jnp.float32) * 0.05

    out = multi_head_attention(x, w_qkv, w_proj, b_proj, num_heads=H)
    out = jax.block_until_ready(out)

    ref = _reference(x, w_qkv, w_proj, b_proj, H)
    assert out.shape == (B, S, E)
    # bf16 MXU operands / bf16 softmax exponent with f32 accumulation -> loosened tolerance.
    assert jnp.allclose(out, ref, atol=5e-2, rtol=5e-2), float(jnp.max(jnp.abs(out - ref)))

    print("KERNEL_OK")
</pallas_src>

<mosaic_0001>
module attributes {stable_mosaic.version = 11 : i64} {
  func.func @_linear_kernel(%arg0: i32, %arg1: i32, %arg2: memref<16x256xbf16, #tpu.memory_space<vmem>>, %arg3: memref<256x256xbf16, #tpu.memory_space<vmem>>, %arg4: memref<16x256xbf16, #tpu.memory_space<vmem>>) attributes {dimension_semantics = [#tpu.dimension_semantics<parallel>, #tpu.dimension_semantics<parallel>], iteration_bounds = array<i64: 1, 3>, scalar_prefetch = 0 : i64, scratch_operands = 0 : i64, tpu.core_type = #tpu.core_type<tc>, window_params = [{transform_indices = @transform_0, window_bounds = array<i64: 16, 256>}, {transform_indices = @transform_1, window_bounds = array<i64: 256, 256>}, {transform_indices = @transform_2, window_bounds = array<i64: 16, 256>}]} {
    %c0 = arith.constant 0 : index
    %c0_0 = arith.constant 0 : index
    %0 = vector.load %arg2[%c0, %c0_0] : memref<16x256xbf16, #tpu.memory_space<vmem>>, vector<16x256xbf16>
    %c0_1 = arith.constant 0 : index
    %c0_2 = arith.constant 0 : index
    %1 = vector.load %arg3[%c0_1, %c0_2] : memref<256x256xbf16, #tpu.memory_space<vmem>>, vector<256x256xbf16>
    %cst = arith.constant dense<0.000000e+00> : vector<16x256xf32>
    %2 = tpu.matmul %0, %1, %cst {dimension_numbers = #tpu.dot_dimension_numbers<[1], [0], [0], [1], [0, 0, 1, 1], [], []>} : vector<16x256xbf16>, vector<256x256xbf16>, vector<16x256xf32> -> vector<16x256xf32>
    %3 = arith.truncf %2 : vector<16x256xf32> to vector<16x256xbf16>
    %c0_3 = arith.constant 0 : index
    %c0_4 = arith.constant 0 : index
    %4 = vector.load %arg4[%c0_3, %c0_4] : memref<16x256xbf16, #tpu.memory_space<vmem>>, vector<16x256xbf16>
    tpu.vector_store %arg4[%c0_3, %c0_4], %3 {strides = array<i32>} : memref<16x256xbf16, #tpu.memory_space<vmem>>, vector<16x256xbf16>,
    return
  }
  func.func @transform_0(%arg0: i32, %arg1: i32) -> (i32, i32) {
    %c0_i32 = arith.constant 0 : i32
    %c0_i32_0 = arith.constant 0 : i32
    return %arg0, %c0_i32 : i32, i32
  }
  func.func @transform_1(%arg0: i32, %arg1: i32) -> (i32, i32) {
    %c0_i32 = arith.constant 0 : i32
    %c0_i32_0 = arith.constant 0 : i32
    return %c0_i32, %arg1 : i32, i32
  }
  func.func @transform_2(%arg0: i32, %arg1: i32) -> (i32, i32) {
    %c0_i32 = arith.constant 0 : i32
    return %arg0, %arg1 : i32, i32
  }
}

</mosaic_0001>

<bundles_post_ra>
// kernel: tpu_custom_call.1
= control target key start
LH: loop header
LB: loop body
LE: loop exit
PB: predicated region body
PF: predicated region fallthrough
CT: control target
= control target key end

     0   :  { %7 = vsyncpa [#allocation3], 0  ;;  %s1246_s0 = inlined_call_operand.hbm [shape: bf16[16,256], index: 0, kind: input, shape index: {}]   ;;  %s1247_s1 = inlined_call_operand.hbm [shape: bf16[256,768], index: 1, kind: input, shape index: {}]   ;;  %s1248_s2 = inlined_call_operand.hbm [shape: bf16[16,768], index: 2, kind: output, shape index: {}]  }
   0x1   :  { %8 = vsyncpa [#allocation6], 0 }
   0x2   :  { %10 = vsyncpa [#allocation6 + $0x1], 0 }
   0x3   :  { %11 = vsyncpa [#allocation4], 0 }
   0x4   :  { %13 = vsyncpa [#allocation4 + $0x1], 0  ;;  %s1027_s9 = smov 0   ;;  %s1029_s10 = smov 0  }
   0x5   :  { %s1031_s11 = smov 0   ;;  %s1033_s12 = smov 0  }
   0x6   :  { %s1035_s13 = smov 0   ;;  %s1037_s14 = smov 0  }
   0x7 LB: > { %s589_s15 = sadd.s32 4294967295, %s1003_s14   ;;  %s590_s16 = sadd.s32 4294967294, %s1003_s14   ;;  %s1003_s14 = sphi %s1037_s14, %s19_s14   ;;  %s999_s13 = sphi %s1035_s13, %s1262_s13   ;;  %s995_s12 = sphi %s1033_s12, %s1261_s12   ;;  %s991_s11 = sphi %s1031_s11, %s1260_s11   ;;  %s987_s10 = sphi %s1029_s10, %s1259_s10   ;;  %s983_s9 = sphi %s1027_s9, %s1258_s9  }
   0x8   : > { %p77_p0 = scmp.ne.s32.totalorder %s987_s10, %s983_s9  ;;  %p1061_p1 = scmp.eq.s32.totalorder %s589_s15, 0 }
   0x9   : > { %p1065_p2 = scmp.eq.s32.totalorder %s589_s15, 2  ;;  %p109_p3 = scmp.eq.s32.totalorder %s590_s16, 2 }
   0xa   : > { %p1071_p4 = por %p1061_p1, %p77_p0  ;;  %p591_p5 = scmp.ge.s32.totalorder %s1003_s14, 1 }
   0xb   : > { %p1076_p6 = por %p109_p3, %p77_p0  ;;  %p116_p7 = scmp.lt.s32.totalorder %s1003_s14, 4 }
   0xc   : > { %s131_s23 = sshll.u32 %s1246_s0, 4  ;;  %s1005_s25 = smov [#allocation2]   ;;  %s132_s23 = int_to_ptr.hbm [resolvable:$true] %s131_s23 }
   0xd   : > { %p1084_p8 = pnand %p591_p5, %p116_p7  ;;  %s133_s26 = sshll.u32 %s1005_s25, 4  ;;  %s134_s26 = int_to_ptr.vmem [resolvable:$true] %s133_s26 }
   0xe   : > { %s1249_s27 = smov 128   ;;  %s1007_s28 = smov 8  }
   0xf   : > { %p786_p9 = pneg %p1084_p8  ;;  %s28_s29 = sadd.s32 1, %s999_s13 }
  0x10   : > { %p29_p11 = scmp.ge.s32.totalorder %s28_s29, 3  ;;  %s64_s30 = sadd.s32 1, %s991_s11 }
  0x11   : > { %p787_p10 = pnand %p786_p9, %p1061_p1  ;;  %p71_p12 = scmp.ne.s32.totalorder %s991_s11, %s987_s10 }
  0x12   : > { %p72_p13 = scmp.eq.s32.totalorder %s1003_s14, 0  ;;  %s1264_s29 = smov (%p29_p11, %s28_s29), 0 }
  0x13   : > { %789 = dma.hbm_to_vmem [thread:$0]  (!%p787_p10), %s132_s23, 256, %s134_s26, [#allocation3], %s1249_s27, %s1249_s27, %s1007_s28  }
  0x14   : > { %p1102_p0 = por %p72_p13, %p71_p12  ;;  %p1108_p3 = por %p1065_p2, %p71_p12 }
  0x15   : > { %s61_s5 = ssub.s32 %s999_s13, %s1264_s29  ;;  %p799_p5 = scmp.lt.s32.totalorder %s1003_s14, 3 }
  0x16   : > { %p62_p7 = scmp.eq.s32.totalorder %s61_s5, 0  ;;  %s147_s6 = sand.u32 1, %s991_s11  }
  0x17   : > { %s594_s7 = sshll.u32 %s147_s6, 8  ;;  %s742_s15 = sshll.u32 %s999_s13, 3 }
  0x18   : > { %s1117_s8 = scalar_select %p62_p7, %s991_s11, %s64_s30  }
  0x19   : > { %s156_s22 = scalar_lea.hbm %s1247_s1, %s742_s15  ;;  %s151_s23 = scalar_lea.vmem [#allocation5], %s594_s7 }
  0x1a   : > { %s159_s25 = sshll.u32 %s151_s23, 4  ;;  %s157_s18 = sshll.u32 %s156_s22, 4  ;;  %s160_s25 = int_to_ptr.vmem [resolvable:$true] %s159_s25  ;;  %s158_s18 = int_to_ptr.hbm [resolvable:$true] %s157_s18 }
  0x1b   : > { %p791_p2 = pnand %p799_p5, %p1102_p0  ;;  %s148_s26 = scalar_lea.sflag [#allocation6], %s147_s6 }
  0x1c   : > { %s1008_s27 = smov 384   ;;  %s1257_s5 = smov 128  }
  0x1d   : > { %793 = dma.hbm_to_vmem [thread:$0]  (!%p791_p2), %s158_s18, 4096, %s160_s25, %s148_s26, %s1008_s27, %s1257_s5, %s1007_s28  }
  0x1e   : > { %171 = sbr.rel (%p1084_p8) target bundleno = 226 (0xe2), region = 28 }
  0x23   : > { %970 = dma.done.wait (%p1061_p1), [#allocation3], 256  }
  0x24   : > { %972 = vsyncadd (%p1061_p1), [#allocation3], 4294967040  ;;  %s1134_s30 = sand.u32 1, %s987_s10  }
  0x25   : > { %s599_s3 = sshll.u32 %s1134_s30, 8  ;;  %s179_s6 = scalar_lea.sflag [#allocation6], %s1134_s30 }
  0x26   : > { %s1138_s7 = scalar_lea.vmem [#allocation5], %s599_s3 }
  0x27   : > { %974 = dma.done.wait (%p1071_p4), %s179_s6, 4096  }
  0x28   : > { %976 = vsyncadd (%p1071_p4), %s179_s6, 4294963200  ;;  %v667_v0 = vld [vmem:[%s1138_s7 + $0x70] sm:$0xf]  ;;  %v760_v1 = vld [vmem:[%s1138_s7 + $0x74] sm:$0xf0]  ;;  %s600_s17 = sshll.u32 %s1134_s30, 4 }
  0x29   : > { %v731_v2 = vld [vmem:[%s1138_s7 + $0xf0] sm:$0xf]  ;;  %v668_v3 = vor.u32 %v760_v1, %v667_v0  ;;  %v776_v4 = vld [vmem:[%s1138_s7 + $0xf4] sm:$0xf0]  ;;  %v759_v5 = vld [vmem:[%s1138_s7 + $0x74] sm:$0xf] }
  0x2a   : > { %v669_v6 = vld [vmem:[%s1138_s7 + $0x78] sm:$0xf0]  ;;  %v732_v7 = vor.u32 %v776_v4, %v731_v2  ;;  %v775_v9 = vld [vmem:[%s1138_s7 + $0xf4] sm:$0xf]  ;;  %v659_v11 = vld [vmem:[%s1138_s7 + $0x60] sm:$0xf] }
  0x2b   : > { %v672_v8 = vor.u32 %v759_v5, %v669_v6  ;;  %v733_v10 = vld [vmem:[%s1138_s7 + $0xf8] sm:$0xf0]  ;;  %412 = vmatpush.bf16.msra.mxu0 %v668_v3  ;;  %v758_v13 = vld [vmem:[%s1138_s7 + $0x64] sm:$0xf0]  ;;  %v723_v14 = vld [vmem:[%s1138_s7 + $0xe0] sm:$0xf] }
  0x2c   : > { %v736_v12 = vor.u32 %v775_v9, %v733_v10  ;;  %v774_v15 = vld [vmem:[%s1138_s7 + $0xe4] sm:$0xf0]  ;;  %426 = vmatpush.bf16.msra.mxu1 %v732_v7  ;;  %v660_v16 = vor.u32 %v758_v13, %v659_v11  ;;  %v757_v18 = vld [vmem:[%s1138_s7 + $0x64] sm:$0xf]  ;;  %v661_v19 = vld [vmem:[%s1138_s7 + $0x68] sm:$0xf0] }
  0x2d   : > { %440 = vmatpush.bf16.msra.mxu2 %v672_v8  ;;  %v724_v17 = vor.u32 %v774_v15, %v723_v14  ;;  %v773_v20 = vld [vmem:[%s1138_s7 + $0xe4] sm:$0xf]  ;;  %v664_v21 = vor.u32 %v757_v18, %v661_v19  ;;  %v725_v22 = vld [vmem:[%s1138_s7 + $0xe8] sm:$0xf0]  ;;  %v651_v23 = vld [vmem:[%s1138_s7 + $0x50] sm:$0xf] }
  0x2e   : > { %454 = vmatpush.bf16.msra.mxu3 %v736_v12  ;;  %v756_v24 = vld [vmem:[%s1138_s7 + $0x54] sm:$0xf0]  ;;  %v728_v25 = vor.u32 %v773_v20, %v725_v22  ;;  %v715_v26 = vld [vmem:[%s1138_s7 + $0xd0] sm:$0xf]  ;;  %v755_v28 = vld [vmem:[%s1138_s7 + $0x54] sm:$0xf] }
  0x2f   : > { %v772_v27 = vld [vmem:[%s1138_s7 + $0xd4] sm:$0xf0]  ;;  %413 = vmatpush.bf16.msra.mxu0 %v660_v16  ;;  %v652_v29 = vor.u32 %v756_v24, %v651_v23  ;;  %v653_v30 = vld [vmem:[%s1138_s7 + $0x58] sm:$0xf0]  ;;  %v771_v31 = vld [vmem:[%s1138_s7 + $0xd4] sm:$0xf] }
  0x30   : > { %v717_v32 = vld [vmem:[%s1138_s7 + $0xd8] sm:$0xf0]  ;;  %427 = vmatpush.bf16.msra.mxu1 %v724_v17  ;;  %v716_v33 = vor.u32 %v772_v27, %v715_v26  ;;  %v656_v34 = vor.u32 %v755_v28, %v653_v30  ;;  %v643_v35 = vld [vmem:[%s1138_s7 + $0x40] sm:$0xf]  ;;  %v754_v36 = vld [vmem:[%s1138_s7 + $0x44] sm:$0xf0] }
  0x31   : > { %441 = vmatpush.bf16.msra.mxu2 %v664_v21  ;;  %v707_v37 = vld [vmem:[%s1138_s7 + $0xc0] sm:$0xf]  ;;  %v720_v38 = vor.u32 %v771_v31, %v717_v32  ;;  %v770_v39 = vld [vmem:[%s1138_s7 + $0xc4] sm:$0xf0]  ;;  %v753_v40 = vld [vmem:[%s1138_s7 + $0x44] sm:$0xf]  ;;  %v644_v44 = vor.u32 %v754_v36, %v643_v35 }
  0x32   : > { %455 = vmatpush.bf16.msra.mxu3 %v728_v25  ;;  %v645_v41 = vld [vmem:[%s1138_s7 + $0x48] sm:$0xf0]  ;;  %v769_v42 = vld [vmem:[%s1138_s7 + $0xc4] sm:$0xf]  ;;  %v708_v45 = vor.u32 %v770_v39, %v707_v37  ;;  %v635_v47 = vld [vmem:[%s1138_s7 + $0x30] sm:$0xf] }
  0x33   : > { %v709_v43 = vld [vmem:[%s1138_s7 + $0xc8] sm:$0xf0]  ;;  %414 = vmatpush.bf16.msra.mxu0 %v652_v29  ;;  %v648_v46 = vor.u32 %v753_v40, %v645_v41  ;;  %v752_v48 = vld [vmem:[%s1138_s7 + $0x34] sm:$0xf0]  ;;  %v699_v49 = vld [vmem:[%s1138_s7 + $0xb0] sm:$0xf] }
  0x34   : > { %428 = vmatpush.bf16.msra.mxu1 %v716_v33  ;;  %v712_v50 = vor.u32 %v769_v42, %v709_v43  ;;  %v768_v51 = vld [vmem:[%s1138_s7 + $0xb4] sm:$0xf0]  ;;  %v751_v52 = vld [vmem:[%s1138_s7 + $0x34] sm:$0xf]  ;;  %v637_v53 = vld [vmem:[%s1138_s7 + $0x38] sm:$0xf0]  ;;  %v636_v56 = vor.u32 %v752_v48, %v635_v47 }
  0x35   : > { %442 = vmatpush.bf16.msra.mxu2 %v656_v34  ;;  %v767_v54 = vld [vmem:[%s1138_s7 + $0xb4] sm:$0xf]  ;;  %v701_v55 = vld [vmem:[%s1138_s7 + $0xb8] sm:$0xf0]  ;;  %v700_v57 = vor.u32 %v768_v51, %v699_v49  ;;  %v640_v58 = vor.u32 %v751_v52, %v637_v53  ;;  %v627_v59 = vld [vmem:[%s1138_s7 + $0x20] sm:$0xf] }
  0x36   : > { %456 = vmatpush.bf16.msra.mxu3 %v720_v38  ;;  %v750_v60 = vld [vmem:[%s1138_s7 + $0x24] sm:$0xf0]  ;;  %v691_v61 = vld [vmem:[%s1138_s7 + $0xa0] sm:$0xf]  ;;  %v704_v62 = vor.u32 %v767_v54, %v701_v55  ;;  %v749_v0 = vld [vmem:[%s1138_s7 + $0x24] sm:$0xf] }
  0x37   : > { %415 = vmatpush.bf16.msra.mxu0 %v644_v44  ;;  %v766_v63 = vld [vmem:[%s1138_s7 + $0xa4] sm:$0xf0]  ;;  %v629_v1 = vld [vmem:[%s1138_s7 + $0x28] sm:$0xf0]  ;;  %v765_v2 = vld [vmem:[%s1138_s7 + $0xa4] sm:$0xf]  ;;  %v628_v4 = vor.u32 %v750_v60, %v627_v59 }
  0x38   : > { %429 = vmatpush.bf16.msra.mxu1 %v708_v45  ;;  %v693_v3 = vld [vmem:[%s1138_s7 + $0xa8] sm:$0xf0]  ;;  %v692_v5 = vor.u32 %v766_v63, %v691_v61  ;;  %v632_v6 = vor.u32 %v749_v0, %v629_v1  ;;  %v619_v7 = vld [vmem:[%s1138_s7 + $0x10] sm:$0xf]  ;;  %v748_v8 = vld [vmem:[%s1138_s7 + $0x14] sm:$0xf0] }
  0x39   : > { %443 = vmatpush.bf16.msra.mxu2 %v648_v46  ;;  %v683_v9 = vld [vmem:[%s1138_s7 + $0x90] sm:$0xf]  ;;  %v696_v10 = vor.u32 %v765_v2, %v693_v3  ;;  %v764_v11 = vld [vmem:[%s1138_s7 + $0x94] sm:$0xf0]  ;;  %v747_v12 = vld [vmem:[%s1138_s7 + $0x14] sm:$0xf]  ;;  %v620_v16 = vor.u32 %v748_v8, %v619_v7 }
  0x3a   : > { %457 = vmatpush.bf16.msra.mxu3 %v712_v50  ;;  %v621_v13 = vld [vmem:[%s1138_s7 + $0x18] sm:$0xf0]  ;;  %v763_v14 = vld [vmem:[%s1138_s7 + $0x94] sm:$0xf]  ;;  %v684_v17 = vor.u32 %v764_v11, %v683_v9  ;;  %v611_v19 = vld [vmem:[%s1138_s7] sm:$0xf] }
  0x3b   : > { %416 = vmatpush.bf16.msra.mxu0 %v636_v56  ;;  %v685_v15 = vld [vmem:[%s1138_s7 + $0x98] sm:$0xf0]  ;;  %v624_v18 = vor.u32 %v747_v12, %v621_v13  ;;  %v746_v20 = vld [vmem:[%s1138_s7 + $0x4] sm:$0xf0]  ;;  %v675_v21 = vld [vmem:[%s1138_s7 + $0x80] sm:$0xf] }
  0x3c   : > { %430 = vmatpush.bf16.msra.mxu1 %v700_v57  ;;  %v688_v22 = vor.u32 %v763_v14, %v685_v15  ;;  %v762_v23 = vld [vmem:[%s1138_s7 + $0x84] sm:$0xf0]  ;;  %v745_v24 = vld [vmem:[%s1138_s7 + $0x4] sm:$0xf]  ;;  %v613_v25 = vld [vmem:[%s1138_s7 + $0x8] sm:$0xf0]  ;;  %v612_v28 = vor.u32 %v746_v20, %v611_v19 }
  0x3d   : > { %444 = vmatpush.bf16.msra.mxu2 %v640_v58  ;;  %v761_v26 = vld [vmem:[%s1138_s7 + $0x84] sm:$0xf]  ;;  %v677_v27 = vld [vmem:[%s1138_s7 + $0x88] sm:$0xf0]  ;;  %v603_v29 = vld [vmem:[#allocation2] sm:$0xf]  ;;  %v676_v31 = vor.u32 %v762_v23, %v675_v21  ;;  %v616_v32 = vor.u32 %v745_v24, %v613_v25 }
  0x3e   : > { %458 = vmatpush.bf16.msra.mxu3 %v704_v62  ;;  %v744_v30 = vld [vmem:[#allocation2 + $0x4] sm:$0xf0]  ;;  %v743_v33 = vld [vmem:[#allocation2 + $0x4] sm:$0xf]  ;;  %v605_v34 = vld [vmem:[#allocation2 + $0x8] sm:$0xf0]  ;;  %v680_v35 = vor.u32 %v761_v26, %v677_v27 }
  0x3f   : > { %417 = vmatpush.bf16.msra.mxu0 %v628_v4  ;;  %v604_v36 = vor.u32 %v744_v30, %v603_v29  ;;  %v608_v37 = vor.u32 %v743_v33, %v605_v34  ;;  %s777_s19 = sshll.u32 %s995_s12, 3  ;;  %s203_s15 = scalar_lea.vmem [#allocation7], %s600_s17 }
  0x40   : > { %431 = vmatpush.bf16.msra.mxu1 %v692_v5  ;;  %s487_s28 = scalar_lea.hbm %s1248_s2, %s777_s19  ;;  %s488_s16 = sshll.u32 %s203_s15, 4  ;;  %s489_s16 = int_to_ptr.vmem [resolvable:$true] %s488_s16 }
  0x41   : > { %445 = vmatpush.bf16.msra.mxu2 %v632_v6  ;;  %s490_s21 = sshll.u32 %s487_s28, 4  ;;  %s473_s12 = scalar_lea.sflag [#allocation4], %s1134_s30  ;;  %s491_s21 = int_to_ptr.hbm [resolvable:$true] %s490_s21 }
  0x42   : > { %459 = vmatpush.bf16.msra.mxu3 %v696_v10  ;;  %s931_s22 = sshra.s32 %s491_s21, 4  ;;  %s937_s26 = scalar_lea.hbm %s1248_s2, 48  ;;  %s932_s22 = int_to_ptr.hbm [resolvable:$true] %s931_s22 }
  0x43   : > { %418 = vmatpush.bf16.msra.mxu0 %v620_v16  ;;  %s933_s23 = scalar_lea.hbm %s932_s22, 16  ;;  %p938_p9 = scmp.lt.s32.totalorder %s932_s22, %s1248_s2 }
  0x44   : > { %432 = vmatpush.bf16.msra.mxu1 %v684_v17  ;;  %p934_p1 = scmp.ne.s32.totalorder %s932_s22, %s933_s23  ;;  %p939_p10 = scmp.lt.s32.totalorder %s937_s26, %s933_s23 }
  0x45   : > { %446 = vmatpush.bf16.msra.mxu2 %v624_v18 }
  0x46   : > { %460 = vmatpush.bf16.msra.mxu3 %v688_v22  ;;  %p935_p4 = pnand %p934_p1, %p1108_p3  ;;  %p940_p11 = por %p939_p10, %p938_p9 }
  0x47   : > { %419 = vmatpush.bf16.msra.mxu0 %v612_v28 }
  0x48   : > { %433 = vmatpush.bf16.msra.mxu1 %v676_v31  ;;  %p936_p8 = pneg %p935_p4 }
  0x49   : > { %447 = vmatpush.bf16.msra.mxu2 %v616_v32 }
  0x4a   : > { %461 = vmatpush.bf16.msra.mxu3 %v680_v35  ;;  %420 = vmatmul.bf16.vlgmr.msra.gmra.mxu0 %v604_v36  ;;  %p941_p12 = pnand %p940_p11, %p936_p8 }
  0x4b   : > { %434 = vmatmul.bf16.vlgmr.msra.gmra.mxu1 %v608_v37 }
  0x4c   : > { %448 = vmatmul.bf16.vlgmr.msra.gmra.mxu2 %v604_v36 }
  0x4d   : > { %462 = vmatmul.bf16.vlgmr.msra.gmra.mxu3 %v608_v37 }
  0xc7   : > { %v421_v38 = vpop.f32.mrf.mxu0 }
  0xc8   : > { %v435_v39 = vpop.f32.mrf.mxu1 }
  0xc9   : > { %v436_v40 = vadd.f32 %v435_v39, %v421_v38 }
  0xcf   : > { %v449_v41 = vpop.f32.mrf.mxu2  ;;  %v423_v45 = vpop.f32.mrf.mxu0 }
  0xd0   : > { %v463_v42 = vpop.f32.mrf.mxu3  ;;  %v437_v46 = vpop.f32.mrf.mxu1 }
  0xd1   : > { %v464_v43 = vadd.f32 %v463_v42, %v449_v41  ;;  %v438_v49 = vadd.f32 %v437_v46, %v423_v45 }
  0xd3   : > { %v468_v44 = vpack.c.bf16 %v464_v43, %v436_v40 }
  0xd5   : > { %470 = vst [vmem:[%s203_s15] sm:$0xff] %v468_v44 }
  0xd7   : > { %v451_v47 = vpop.f32.mrf.mxu2 }
  0xd8   : > { %v465_v48 = vpop.f32.mrf.mxu3 }
  0xd9   : > { %v466_v50 = vadd.f32 %v465_v48, %v451_v47 }
  0xdb   : > { %v469_v51 = vpack.c.bf16 %v466_v50, %v438_v49 }
  0xdd   : > { %471 = vst [vmem:[%s203_s15 + $0x8] sm:$0xff] %v469_v51 }
  0xde   : > { %944 = shalt.err (!%p941_p12)
}
  0xdf   : > { %s1009_s30 = smov 128   ;;  %s1010_s6 = smov 384  }
  0xe0   : > { %s1011_s7 = smov 8  }
  0xe1   : > { %784 = dma.vmem_to_hbm [thread:$0]  (%p1108_p3), %s489_s16, 256, %s491_s21, %s473_s12, %s1009_s30, %s1010_s6, %s1011_s7  }
  0xe2 PF: > { %p801_p13 = scmp.ge.s32.totalorder %s1003_s14, 2  ;;  %s505_s17 = sand.u32 1, %s983_s9  }
  0xe3   : > { %s506_s19 = scalar_lea.sflag [#allocation4], %s505_s17 }
  0xe4   : > { %p795_p0 = pnand %p801_p13, %p1076_p6 }
  0xe6   : > { %p796_p5 = pneg %p795_p0 }
  0xe8   : > { %978 = dma.done.wait (%p796_p5), %s506_s19, 256  }
  0xe9   : > { %980 = vsyncadd (%p796_p5), %s506_s19, 4294967040  ;;  %s19_s14 = sadd.s32 1, %s1003_s14   ;;  %s1258_s9 = smov %s987_s10 }
  0xea   : > { %p16_p7 = scmp.ge.s32.totalorder %s19_s14, 5   ;;  %s1259_s10 = smov %s991_s11 }
  0xeb   : > { %s1260_s11 = smov %s1117_s8  ;;  %s1261_s12 = smov %s999_s13 }
  0xec   : > { %s1262_s13 = smov %s1264_s29  ;;  %18 = sbr.rel (!%p16_p7) target bundleno = 7 (0x7), region = 79 }
  0xf1   :  { %512 = vsyncpa [#allocation3], 1 }
  0xf2   :  { %514 = vsyncpa [#allocation3 + $0x1], 1 }
  0xf3   :  { %515 = vsyncpa [#allocation6], 1 }
  0xf4   :  { %517 = vsyncpa [#allocation6 + $0x1], 1 }
  0xf5   :  { %518 = vsyncpa [#allocation4], 1 }
  0xf6   :  { %520 = vsyncpa [#allocation4 + $0x1], 1 }

</bundles_post_ra>
